<compile_context>
chip_gen: v7x
topology: tpu7x:2x2x1
jax: 0.10.0
libtpu: 0.0.40
codegen_flags: <defaults>
</compile_context>

<pallas_src>
import jax
import jax.numpy as jnp
from jax.experimental import pallas as pl
from jax.experimental.pallas import tpu as pltpu


_LANE = 128
_DEFAULT_BLOCK_BYTES = 4 * 1024 * 1024     # ~4 MiB/block; in+out double buffers ~16 MiB VMEM
_VMEM_LIMIT_BYTES = 48 * 1024 * 1024       # explicit scoped VMEM limit, safe on v5e/v6e/v7x
_LANE_CANDIDATES = (8192, 4096, 2048, 1024, 512, 256)


def _cdiv(a: int, b: int) -> int:
    return -(-a // b)


def _round_up(a: int, b: int) -> int:
    return _cdiv(a, b) * b


def _min_sublanes(dtype) -> int:
    # Sub-32-bit dtypes pack along sublanes: 8 rows (4-byte), 16 (2-byte), 32 (1-byte).
    return max(8, 32 // jnp.dtype(dtype).itemsize)


def _mul_kernel(w_ref, x_ref, o_ref):
    # w_ref: (1,) float32 scalar in SMEM (one scalar-slot load, invisible vs HBM cost).
    # x_ref/o_ref: one (tile_rows, lane_width) VMEM block.
    o_ref[...] = (x_ref[...] * w_ref[0]).astype(o_ref.dtype)


def _pick_tile_rows(rows: int, sub: int, max_rows: int) -> int:
    """Pick a row-tile (multiple of `sub`, <= max_rows) giving >=4 and preferably an
    even number of grid steps, so the pipeline has depth and v7x megacore splits work."""
    if rows <= sub:
        return rows                                   # tiny array: one full block
    max_rows = max(max_rows // sub * sub, sub)
    min_steps = _cdiv(rows, max_rows)                 # forced by VMEM block cap
    min_steps = max(min_steps, min(4, rows // sub))   # aim for >= 4 steps when possible
    fallback = None
    for steps in range(min_steps, min_steps + 16):
        tile = min(max_rows, _round_up(_cdiv(rows, steps), sub))
        actual = _cdiv(rows, tile)
        if fallback is None:
            fallback = tile
        if actual == 1 or actual % 2 == 0:            # even grid -> both v7x TCs busy
            return tile
    return fallback


def _mul_bulk(flat, w_arr, max_block_bytes: int):
    """Multiply a 1-D, 128-divisible array by the scalar in w_arr via the Pallas kernel."""
    n = flat.size
    dtype = flat.dtype
    itemsize = jnp.dtype(dtype).itemsize
    sub = _min_sublanes(dtype)

    # Widest lane-dense view that still leaves a few sublane-multiples of rows.
    lane_width = _LANE
    for cand in _LANE_CANDIDATES:
        if n % cand == 0 and (n // cand) >= sub:
            lane_width = cand
            break
    rows = n // lane_width
    x2d = flat.reshape(rows, lane_width)

    max_rows = max((max_block_bytes // (lane_width * itemsize)) // sub * sub, sub)
    tile_rows = _pick_tile_rows(rows, sub, max_rows)
    grid = (_cdiv(rows, tile_rows),)

    out2d = pl.pallas_call(
        _mul_kernel,
        out_shape=jax.ShapeDtypeStruct((rows, lane_width), dtype),
        grid=grid,
        in_specs=[
            pl.BlockSpec(memory_space=pltpu.MemorySpace.SMEM),          # scalar weight
            pl.BlockSpec((tile_rows, lane_width), lambda i: (i, 0)),    # data tiles
        ],
        out_specs=pl.BlockSpec((tile_rows, lane_width), lambda i: (i, 0)),
        compiler_params=pltpu.CompilerParams(
            dimension_semantics=("parallel",),
            vmem_limit_bytes=_VMEM_LIMIT_BYTES,
        ),
        cost_estimate=pl.CostEstimate(
            flops=n, transcendentals=0, bytes_accessed=2 * n * itemsize),
    )(w_arr, x2d)
    return out2d


def mul_pallas(x: jax.Array, weight, *, max_block_bytes: int = _DEFAULT_BLOCK_BYTES) -> jax.Array:
    """Compute x * weight (scalar weight) with a Pallas TPU kernel. Matches torch `x * self.weight`."""
    orig_shape = x.shape
    dtype = x.dtype
    n = x.size
    if n == 0:
        return x

    # Weight lives in SMEM as f32: works with Python scalars AND traced jax values.
    w_arr = jnp.asarray(weight, dtype=jnp.float32).reshape(1)

    flat = x.reshape(-1)
    rem = n % _LANE
    bulk_n = n - rem

    parts = []
    if bulk_n:
        bulk = flat if rem == 0 else flat[:bulk_n]
        bulk_out = _mul_bulk(bulk, w_arr, max_block_bytes)
        if rem == 0:
            return bulk_out.reshape(orig_shape)
        parts.append(bulk_out.reshape(-1))
    if rem:
        # <128-element tail (or an entirely sub-lane-sized array): plain XLA, same math
        # as the kernel (promote to f32, multiply, cast back). No full-array pad/slice.
        tail = flat[bulk_n:]
        parts.append((tail.astype(jnp.float32) * w_arr[0]).astype(dtype))

    out_flat = parts[0] if len(parts) == 1 else jnp.concatenate(parts)
    return out_flat.reshape(orig_shape)


def _ref_mul(x, weight):
    # Reference with identical arithmetic (f32 multiply, cast back to x dtype).
    return (x.astype(jnp.float32) * jnp.float32(weight)).astype(x.dtype)


if __name__ == "__main__":
    key = jax.random.PRNGKey(0)
    k1, k2, k3, k4, k5 = jax.random.split(key, 5)
    weight = 0.5

    # 1) NCHW f32 feature map (ResNet-style usage): lane-dense aligned path.
    x1 = jax.random.normal(k1, (2, 4, 16, 16), dtype=jnp.float32)
    o1 = mul_pallas(x1, weight)
    jax.block_until_ready(o1)
    assert o1.shape == x1.shape and o1.dtype == x1.dtype
    assert jnp.array_equal(o1, _ref_mul(x1, weight)), "f32 mismatch"

    # 2) bf16 input: exercises the dtype-dependent sublane minimum.
    x2 = jax.random.normal(k2, (2, 4, 16, 16), dtype=jnp.bfloat16)
    o2 = mul_pallas(x2, weight)
    jax.block_until_ready(o2)
    assert jnp.array_equal(o2, _ref_mul(x2, weight)), "bf16 mismatch"

    # 3) Tiny non-128-divisible size (<128 elems): XLA tail fallback.
    x3 = jax.random.normal(k3, (3, 5, 7), dtype=jnp.float32)
    o3 = mul_pallas(x3, weight)
    jax.block_until_ready(o3)
    assert jnp.array_equal(o3, _ref_mul(x3, weight)), "tail-only mismatch"

    # 4) Non-128-divisible with a kernel-processed 128-aligned bulk + small XLA tail.
    x4 = jax.random.normal(k4, (3, 1000), dtype=jnp.float32)
    o4 = mul_pallas(x4, weight)
    jax.block_until_ready(o4)
    assert jnp.array_equal(o4, _ref_mul(x4, weight)), "bulk+tail mismatch"

    # 5) Multi-block path with a partial last tile (small block cap forces many grid steps).
    x5 = jax.random.normal(k5, (1, 8, 130, 128), dtype=jnp.float32)
    o5 = mul_pallas(x5, weight, max_block_bytes=16 * 1024)
    jax.block_until_ready(o5)
    assert jnp.array_equal(o5, _ref_mul(x5, weight)), "multi-block mismatch"

    # 6) Traced weight under jit (learned-scalar use case): no float() concretization.
    o6 = jax.jit(mul_pallas)(x1, jnp.float32(0.25))
    jax.block_until_ready(o6)
    assert jnp.array_equal(o6, _ref_mul(x1, 0.25)), "jit/traced-weight mismatch"

    print("KERNEL_OK")
</pallas_src>

<mosaic_0001>
module attributes {stable_mosaic.version = 11 : i64} {
  func.func @_mul_kernel(%arg0: i32, %arg1: memref<1xf32, #tpu.memory_space<smem>>, %arg2: memref<8x256xf32, #tpu.memory_space<vmem>>, %arg3: memref<8x256xf32, #tpu.memory_space<vmem>>) attributes {dimension_semantics = [#tpu.dimension_semantics<parallel>], iteration_bounds = array<i64: 1>, scalar_prefetch = 0 : i64, scratch_operands = 0 : i64, tpu.core_type = #tpu.core_type<tc>, window_params = [{transform_indices = @transform_0, window_bounds = array<i64: 1>}, {transform_indices = @transform_1, window_bounds = array<i64: 8, 256>}, {transform_indices = @transform_2, window_bounds = array<i64: 8, 256>}]} {
    %c0 = arith.constant 0 : index
    %c0_0 = arith.constant 0 : index
    %0 = vector.load %arg2[%c0, %c0_0] : memref<8x256xf32, #tpu.memory_space<vmem>>, vector<8x256xf32>
    %c0_1 = arith.constant 0 : index
    %1 = memref.load %arg1[%c0_1] : memref<1xf32, #tpu.memory_space<smem>>
    %2 = vector.broadcast %1 : f32 to vector<8x256xf32>
    %3 = arith.mulf %0, %2 : vector<8x256xf32>
    %c0_2 = arith.constant 0 : index
    %c0_3 = arith.constant 0 : index
    %4 = vector.load %arg3[%c0_2, %c0_3] : memref<8x256xf32, #tpu.memory_space<vmem>>, vector<8x256xf32>
    tpu.vector_store %arg3[%c0_2, %c0_3], %3 {strides = array<i32>} : memref<8x256xf32, #tpu.memory_space<vmem>>, vector<8x256xf32>,
    return
  }
  func.func @transform_0(%arg0: i32) -> i32 {
    %c0_i32 = arith.constant 0 : i32
    %c0_i32_0 = arith.constant 0 : i32
    return %c0_i32 : i32
  }
  func.func @transform_1(%arg0: i32) -> (i32, i32) {
    %c0_i32 = arith.constant 0 : i32
    %c0_i32_0 = arith.constant 0 : i32
    return %arg0, %c0_i32 : i32, i32
  }
  func.func @transform_2(%arg0: i32) -> (i32, i32) {
    %c0_i32 = arith.constant 0 : i32
    %c0_i32_0 = arith.constant 0 : i32
    return %arg0, %c0_i32 : i32, i32
  }
}

</mosaic_0001>

<bundles_post_ra>
// kernel: tpu_custom_call.1
= control target key start
LH: loop header
LB: loop body
LE: loop exit
PB: predicated region body
PF: predicated region fallthrough
CT: control target
= control target key end

     0   :  { %8 = vsyncpa [#allocation4], 0  ;;  %s142_s0 = inlined_call_operand.<no memory space> [shape: f32[1], index: 0, kind: input, shape index: {}]   ;;  %s143_s1 = inlined_call_operand.hbm [shape: f32[8,256], index: 1, kind: input, shape index: {}]   ;;  %s144_s2 = inlined_call_operand.hbm [shape: f32[8,256], index: 2, kind: output, shape index: {}]  }
   0x1   :  { %9 = vsyncpa [#allocation5], 0  ;;  %s98_s9 = smov [#allocation3]   ;;  %s50_s13 = scalar_lea.hbm %s143_s1, 256 }
   0x2   :  { %s18_s10 = sshll.u32 %s98_s9, 4  ;;  %p51_p0 = scmp.ne.s32.totalorder %s143_s1, %s50_s13  ;;  %s19_s10 = int_to_ptr.vmem [resolvable:$true] %s18_s10 }
   0x3   :  { %p54_p1 = scmp.lt.u32.totalorder %s50_s13, %s143_s1 }
   0x5   :  { %p56_p2 = pnand %p54_p1, %p51_p0 }
   0x7   :  { %59 = shalt.err (!%p56_p2)
}
   0x8   :  { %s60_s18 = scalar_lea.vmem %s19_s10, 256  ;;  %p65_p4 = scmp.lt.s32.totalorder %s19_s10, %s19_s10 }
   0x9   :  { %p61_p3 = scmp.ne.s32.totalorder %s19_s10, %s60_s18  ;;  %p66_p5 = scmp.lt.s32.totalorder %s60_s18, %s60_s18 }
   0xb   :  { %p67_p6 = por %p66_p5, %p65_p4 }
   0xd   :  { %p68_p7 = pnand %p67_p6, %p61_p3 }
   0xf   :  { %71 = shalt.err (!%p68_p7)
}
  0x10   :  { %21 = dma.hbm_to_vmem [thread:$0]  %s143_s1, 256, %s19_s10, [#allocation4]  }
  0x11   :  { %94 = dma.done.wait [#allocation4], 256  }
  0x12   :  { %95 = vsyncadd [#allocation4], 4294967040  ;;  %v28_v0 = vstv %s142_s0  ;;  %s99_s23 = smov [#allocation6]   ;;  %v25_v1 = vld [vmem:[#allocation3] sm:$0xff]  ;;  %v26_v2 = vld [vmem:[#allocation3 + $0x8] sm:$0xff] }
  0x13   :  { %s39_s24 = sshll.u32 %s99_s23, 4  ;;  %v29_v3 = vmul.f32 %v28_v0, %v25_v1  ;;  %v30_v4 = vmul.f32 %v28_v0, %v26_v2  ;;  %s40_s24 = int_to_ptr.vmem [resolvable:$true] %s39_s24 }
  0x14   :  { %s72_s25 = scalar_lea.vmem %s40_s24, 256  ;;  %p77_p9 = scmp.lt.s32.totalorder %s40_s24, %s40_s24 }
  0x15   :  { %31 = vst [vmem:[#allocation6] sm:$0xff] %v29_v3  ;;  %32 = vst [vmem:[#allocation6 + $0x8] sm:$0xff] %v30_v4  ;;  %p73_p8 = scmp.ne.s32.totalorder %s40_s24, %s72_s25  ;;  %p78_p10 = scmp.lt.s32.totalorder %s72_s25, %s72_s25 }
  0x17   :  { %p79_p11 = por %p78_p10, %p77_p9 }
  0x19   :  { %p80_p12 = pnand %p79_p11, %p73_p8 }
  0x1b   :  { %83 = shalt.err (!%p80_p12)
}
  0x1c   :  { %s84_s0 = scalar_lea.hbm %s144_s2, 256 }
  0x1d   :  { %p85_p13 = scmp.ne.s32.totalorder %s144_s2, %s84_s0  ;;  %p88_p0 = scmp.lt.u32.totalorder %s84_s0, %s144_s2 }
  0x1f   :  { %p90_p1 = pnand %p88_p0, %p85_p13 }
  0x21   :  { %93 = shalt.err (!%p90_p1)
}
  0x22   :  { %42 = dma.vmem_to_hbm [thread:$0]  %s40_s24, 256, %s144_s2, [#allocation5]  }
  0x23   :  { %96 = dma.done.wait [#allocation5], 256  }
  0x24   :  { %97 = vsyncadd [#allocation5], 4294967040 }
  0x25   :  { %46 = vsyncpa [#allocation4], 1 }
  0x26   :  { %47 = vsyncpa [#allocation5], 1 }

</bundles_post_ra>
